<compile_context>
chip_gen: v6e
topology: v6e:2x2x1
jax: 0.10.0
libtpu: 0.0.40
codegen_flags: <defaults>
</compile_context>

<pallas_src>
import math
import functools

import jax
import jax.numpy as jnp
from jax.experimental import pallas as pl
from jax.experimental.pallas import tpu as pltpu


_SQRT2_INV = 1.0 / math.sqrt(2.0)


def _dwconv_gelu_kernel(x_ref, w_ref, b_ref, o_ref, acc_ref, *, kernel_size, k_in, m):
    # x_ref:   (TB, kernel_size*K_in, TILE_L)   tap-expanded input, row = k*K_in + c
    # w_ref:   (kernel_size, C_out, 1)          resident (constant index_map)
    # b_ref:   (C_out, 1)                       resident
    # o_ref:   (TB, C_out, TILE_L)
    # acc_ref: (TB, C_out, TILE_L) f32 scratch  (dense pre-activation assembly)
    w = w_ref[...].astype(jnp.float32)          # (ks, C_out, 1)
    b = b_ref[...].astype(jnp.float32)          # (C_out, 1)

    # Grouped (depthwise-style) conv: out channel oc = c*m + j uses input channel c only.
    for c in range(k_in):
        g0 = c * m
        acc = b[g0:g0 + m][None, :, :]          # (1, m, 1) -> broadcasts up on first MAC
        for k in range(kernel_size):
            xt = x_ref[:, k * k_in + c, :].astype(jnp.float32)        # (TB, TILE_L)
            wk = w[k, g0:g0 + m][None, :, :]                          # (1, m, 1)
            acc = acc + xt[:, None, :] * wk                           # (TB, m, TILE_L)
        acc_ref[:, g0:g0 + m, :] = acc

    # Dense (C_out, TILE_L) exact erf-GELU (matches torch.nn.GELU() default) + dense store.
    z = acc_ref[...]
    y = 0.5 * z * (1.0 + jax.lax.erf(z * _SQRT2_INV))
    o_ref[...] = y.astype(o_ref.dtype)


def simple_conv1d_forward(x, weight, bias, *, stride, tile_l=4096,
                          vmem_block_budget=24 * 1024 * 1024):
    """x: (B, L, K_in). weight: (C_out, 1, kernel_size). bias: (C_out,).
    Returns (B, L_out, C_out), matching SimpleConv1D.forward (dropout in eval mode)."""
    B, L, K_in = x.shape
    C_out, _, kernel_size = weight.shape
    assert C_out % K_in == 0, "groups=in_channel requires out_channel % in_channel == 0"
    m = C_out // K_in
    L_out = (L - kernel_size) // stride + 1
    assert L_out > 0

    LANE = 128
    KC = kernel_size * K_in

    # ---- L tiling (lane axis): single lane-dense tile if it fits, else tile_l chunks ----
    if L_out <= tile_l:
        TILE_L = ((L_out + LANE - 1) // LANE) * LANE
        L_pad = TILE_L
    else:
        TILE_L = max(LANE, (tile_l // LANE) * LANE)
        L_pad = ((L_out + TILE_L - 1) // TILE_L) * TILE_L
    n_l = L_pad // TILE_L

    # ---- batch blocking: amortize per-step overhead, stay inside a VMEM budget ----
    def _rup(v, q):
        return ((v + q - 1) // q) * q

    itemsize = jnp.dtype(x.dtype).itemsize
    kc_pad = _rup(KC, 8)
    co_pad = _rup(C_out, 8)
    row_hbm = (kc_pad + co_pad) * TILE_L * itemsize                 # bytes moved per batch row/step
    row_vmem = (2 * kc_pad + 3 * co_pad + 2 * C_out) * TILE_L * 4   # dbl-buf blocks + scratch + temps
    tb = min(B,
             max(1, -(-2 * 1024 * 1024 // row_hbm)),                # target >= ~2 MiB per step
             max(1, vmem_block_budget // row_vmem))
    if n_l == 1 and B > 1:
        tb = min(tb, max(1, B // 2))                                # keep >=2 grid steps (v7x: 2 TCs)
    while B % tb:
        tb -= 1
    n_b = B // tb

    # ---- wrapper-side tap expansion (cheap XLA strided slices), channels-first, lane-dense ----
    x_cf = jnp.transpose(x, (0, 2, 1))                              # (B, K_in, L)
    last = (L_out - 1) * stride + 1
    taps = []
    for k in range(kernel_size):
        tap = jax.lax.slice(x_cf, (0, 0, k), (B, K_in, k + last), (1, 1, stride))  # (B, K_in, L_out)
        taps.append(jnp.pad(tap, ((0, 0), (0, 0), (0, L_pad - L_out))))
    x_taps = jnp.concatenate(taps, axis=1)                          # (B, KC, L_pad), row = k*K_in + c

    # grouped-conv weights / bias, channel index oc = c*m + j
    w3 = jnp.transpose(weight, (2, 0, 1))                           # (ks, C_out, 1)
    b2 = bias.reshape(C_out, 1)

    kernel = functools.partial(_dwconv_gelu_kernel,
                               kernel_size=kernel_size, k_in=K_in, m=m)

    cost = pl.CostEstimate(
        flops=int(B * C_out * L_out * (2 * kernel_size + 8)),
        transcendentals=int(B * C_out * L_out),
        bytes_accessed=int((x_taps.size + B * C_out * L_pad) * itemsize
                           + (w3.size + b2.size) * itemsize),
    )

    out_cf = pl.pallas_call(
        kernel,
        out_shape=jax.ShapeDtypeStruct((B, C_out, L_pad), x.dtype),
        grid_spec=pltpu.PrefetchScalarGridSpec(
            num_scalar_prefetch=0,
            grid=(n_b, n_l),
            in_specs=[
                pl.BlockSpec((tb, KC, TILE_L), lambda b, l: (b, 0, l)),
                pl.BlockSpec((kernel_size, C_out, 1), lambda b, l: (0, 0, 0)),
                pl.BlockSpec((C_out, 1), lambda b, l: (0, 0)),
            ],
            out_specs=pl.BlockSpec((tb, C_out, TILE_L), lambda b, l: (b, 0, l)),
            scratch_shapes=[pltpu.VMEM((tb, C_out, TILE_L), jnp.float32)],
        ),
        compiler_params=pltpu.CompilerParams(
            dimension_semantics=("parallel", "parallel"),
            vmem_limit_bytes=48 * 1024 * 1024,
        ),
        cost_estimate=cost,
    )(x_taps, w3, b2)

    # (B, C_out, L_pad) -> (B, L_out, C_out)  (single transpose pass; required by module API)
    return jnp.transpose(out_cf[:, :, :L_out], (0, 2, 1))


def _reference(x, weight, bias, *, stride):
    B, L, K_in = x.shape
    C_out, _, kernel_size = weight.shape
    m = C_out // K_in
    L_out = (L - kernel_size) // stride + 1
    y = jnp.zeros((B, L_out, C_out), jnp.float32)
    for k in range(kernel_size):
        xs = x[:, k:k + (L_out - 1) * stride + 1:stride, :]      # (B, L_out, K_in)
        xs_rep = jnp.repeat(xs, m, axis=-1)                      # (B, L_out, C_out), oc -> group oc//m
        y = y + xs_rep * weight[:, 0, k][None, None, :]
    y = y + bias[None, None, :]
    return 0.5 * y * (1.0 + jax.lax.erf(y / math.sqrt(2.0)))


if __name__ == "__main__":
    # SimpleConv1D(in_channel=4, out_channel=8, kernel_size=3, stride=2)
    B, L = 2, 16
    in_channel, out_channel, kernel_size, stride = 4, 8, 3, 2

    key = jax.random.PRNGKey(0)
    kx, kw, kb = jax.random.split(key, 3)
    x = jax.random.normal(kx, (B, L, in_channel), dtype=jnp.float32)
    # Conv1d(groups=in_channel) parameter shapes: weight (C_out, 1, kernel_size), bias (C_out,)
    fan_in = 1 * kernel_size
    bound = 1.0 / math.sqrt(fan_in)
    weight = jax.random.uniform(kw, (out_channel, 1, kernel_size),
                                minval=-bound, maxval=bound, dtype=jnp.float32)
    bias = jax.random.uniform(kb, (out_channel,), minval=-bound, maxval=bound,
                              dtype=jnp.float32)

    out = simple_conv1d_forward(x, weight, bias, stride=stride)
    out = jax.block_until_ready(out)

    ref = _reference(x, weight, bias, stride=stride)
    assert out.shape == (B, (L - kernel_size) // stride + 1, out_channel)
    assert jnp.allclose(out, ref, atol=1e-5, rtol=1e-5)

    print("KERNEL_OK")
</pallas_src>

<mosaic_0001>
module attributes {stable_mosaic.version = 11 : i64} {
  func.func @_dwconv_gelu_kernel(%arg0: i32, %arg1: i32, %arg2: memref<1x12x128xf32, #tpu.memory_space<vmem>>, %arg3: memref<3x8x1xf32, #tpu.memory_space<vmem>>, %arg4: memref<8x1xf32, #tpu.memory_space<vmem>>, %arg5: memref<1x8x128xf32, #tpu.memory_space<vmem>>, %arg6: memref<1x8x128xf32, #tpu.memory_space<vmem>>) attributes {dimension_semantics = [#tpu.dimension_semantics<parallel>, #tpu.dimension_semantics<parallel>], iteration_bounds = array<i64: 2, 1>, scalar_prefetch = 0 : i64, scratch_operands = 1 : i64, tpu.core_type = #tpu.core_type<tc>, window_params = [{transform_indices = @transform_0, window_bounds = array<i64: 1, 12, 128>}, {pipeline_mode = #tpu.pipeline_mode<synchronous>, transform_indices = @transform_1, window_bounds = array<i64: 3, 8, 1>}, {pipeline_mode = #tpu.pipeline_mode<synchronous>, transform_indices = @transform_2, window_bounds = array<i64: 8, 1>}, {transform_indices = @transform_3, window_bounds = array<i64: 1, 8, 128>}]} {
    %c0 = arith.constant 0 : index
    %c0_0 = arith.constant 0 : index
    %c0_1 = arith.constant 0 : index
    %0 = vector.load %arg3[%c0, %c0_0, %c0_1] : memref<3x8x1xf32, #tpu.memory_space<vmem>>, vector<3x8x1xf32>
    %c0_2 = arith.constant 0 : index
    %c0_3 = arith.constant 0 : index
    %1 = vector.load %arg4[%c0_2, %c0_3] : memref<8x1xf32, #tpu.memory_space<vmem>>, vector<8x1xf32>
    %2 = vector.extract_strided_slice %1 {offsets = [0, 0], sizes = [2, 1], strides = [1, 1]} : vector<8x1xf32> to vector<2x1xf32>
    %3 = vector.shape_cast %2 : vector<2x1xf32> to vector<1x2x1xf32>
    %c0_4 = arith.constant 0 : index
    %c0_5 = arith.constant 0 : index
    %c0_6 = arith.constant 0 : index
    %4 = vector.load %arg2[%c0_4, %c0_5, %c0_6] : memref<1x12x128xf32, #tpu.memory_space<vmem>>, vector<1x1x128xf32>
    %5 = vector.shape_cast %4 : vector<1x1x128xf32> to vector<1x128xf32>
    %6 = vector.extract_strided_slice %0 {offsets = [0, 0, 0], sizes = [1, 2, 1], strides = [1, 1, 1]} : vector<3x8x1xf32> to vector<1x2x1xf32>
    %7 = vector.shape_cast %6 : vector<1x2x1xf32> to vector<2x1xf32>
    %8 = vector.shape_cast %7 : vector<2x1xf32> to vector<1x2x1xf32>
    %9 = vector.shape_cast %5 : vector<1x128xf32> to vector<1x1x128xf32>
    %10 = vector.broadcast %9 : vector<1x1x128xf32> to vector<1x2x128xf32>
    %11 = vector.broadcast %8 : vector<1x2x1xf32> to vector<1x2x128xf32>
    %12 = arith.mulf %10, %11 : vector<1x2x128xf32>
    %13 = vector.broadcast %3 : vector<1x2x1xf32> to vector<1x2x128xf32>
    %14 = arith.addf %13, %12 : vector<1x2x128xf32>
    %c0_7 = arith.constant 0 : index
    %c4 = arith.constant 4 : index
    %c0_8 = arith.constant 0 : index
    %15 = vector.load %arg2[%c0_7, %c4, %c0_8] : memref<1x12x128xf32, #tpu.memory_space<vmem>>, vector<1x1x128xf32>
    %16 = vector.shape_cast %15 : vector<1x1x128xf32> to vector<1x128xf32>
    %17 = vector.extract_strided_slice %0 {offsets = [1, 0, 0], sizes = [1, 2, 1], strides = [1, 1, 1]} : vector<3x8x1xf32> to vector<1x2x1xf32>
    %18 = vector.shape_cast %17 : vector<1x2x1xf32> to vector<2x1xf32>
    %19 = vector.shape_cast %18 : vector<2x1xf32> to vector<1x2x1xf32>
    %20 = vector.shape_cast %16 : vector<1x128xf32> to vector<1x1x128xf32>
    %21 = vector.broadcast %20 : vector<1x1x128xf32> to vector<1x2x128xf32>
    %22 = vector.broadcast %19 : vector<1x2x1xf32> to vector<1x2x128xf32>
    %23 = arith.mulf %21, %22 : vector<1x2x128xf32>
    %24 = arith.addf %14, %23 : vector<1x2x128xf32>
    %c0_9 = arith.constant 0 : index
    %c8 = arith.constant 8 : index
    %c0_10 = arith.constant 0 : index
    %25 = vector.load %arg2[%c0_9, %c8, %c0_10] : memref<1x12x128xf32, #tpu.memory_space<vmem>>, vector<1x1x128xf32>
    %26 = vector.shape_cast %25 : vector<1x1x128xf32> to vector<1x128xf32>
    %27 = vector.extract_strided_slice %0 {offsets = [2, 0, 0], sizes = [1, 2, 1], strides = [1, 1, 1]} : vector<3x8x1xf32> to vector<1x2x1xf32>
    %28 = vector.shape_cast %27 : vector<1x2x1xf32> to vector<2x1xf32>
    %29 = vector.shape_cast %28 : vector<2x1xf32> to vector<1x2x1xf32>
    %30 = vector.shape_cast %26 : vector<1x128xf32> to vector<1x1x128xf32>
    %31 = vector.broadcast %30 : vector<1x1x128xf32> to vector<1x2x128xf32>
    %32 = vector.broadcast %29 : vector<1x2x1xf32> to vector<1x2x128xf32>
    %33 = arith.mulf %31, %32 : vector<1x2x128xf32>
    %34 = arith.addf %24, %33 : vector<1x2x128xf32>
    %c0_11 = arith.constant 0 : index
    %c0_12 = arith.constant 0 : index
    %c0_13 = arith.constant 0 : index
    %35 = vector.load %arg6[%c0_11, %c0_12, %c0_13] : memref<1x8x128xf32, #tpu.memory_space<vmem>>, vector<1x2x128xf32>
    tpu.vector_store %arg6[%c0_11, %c0_12, %c0_13], %34 {strides = array<i32>} : memref<1x8x128xf32, #tpu.memory_space<vmem>>, vector<1x2x128xf32>,
    %36 = vector.extract_strided_slice %1 {offsets = [2, 0], sizes = [2, 1], strides = [1, 1]} : vector<8x1xf32> to vector<2x1xf32>
    %37 = vector.shape_cast %36 : vector<2x1xf32> to vector<1x2x1xf32>
    %c0_14 = arith.constant 0 : index
    %c1 = arith.constant 1 : index
    %c0_15 = arith.constant 0 : index
    %38 = vector.load %arg2[%c0_14, %c1, %c0_15] : memref<1x12x128xf32, #tpu.memory_space<vmem>>, vector<1x1x128xf32>
    %39 = vector.shape_cast %38 : vector<1x1x128xf32> to vector<1x128xf32>
    %40 = vector.extract_strided_slice %0 {offsets = [0, 2, 0], sizes = [1, 2, 1], strides = [1, 1, 1]} : vector<3x8x1xf32> to vector<1x2x1xf32>
    %41 = vector.shape_cast %40 : vector<1x2x1xf32> to vector<2x1xf32>
    %42 = vector.shape_cast %41 : vector<2x1xf32> to vector<1x2x1xf32>
    %43 = vector.shape_cast %39 : vector<1x128xf32> to vector<1x1x128xf32>
    %44 = vector.broadcast %43 : vector<1x1x128xf32> to vector<1x2x128xf32>
    %45 = vector.broadcast %42 : vector<1x2x1xf32> to vector<1x2x128xf32>
    %46 = arith.mulf %44, %45 : vector<1x2x128xf32>
    %47 = vector.broadcast %37 : vector<1x2x1xf32> to vector<1x2x128xf32>
    %48 = arith.addf %47, %46 : vector<1x2x128xf32>
    %c0_16 = arith.constant 0 : index
    %c5 = arith.constant 5 : index
    %c0_17 = arith.constant 0 : index
    %49 = vector.load %arg2[%c0_16, %c5, %c0_17] : memref<1x12x128xf32, #tpu.memory_space<vmem>>, vector<1x1x128xf32>
    %50 = vector.shape_cast %49 : vector<1x1x128xf32> to vector<1x128xf32>
    %51 = vector.extract_strided_slice %0 {offsets = [1, 2, 0], sizes = [1, 2, 1], strides = [1, 1, 1]} : vector<3x8x1xf32> to vector<1x2x1xf32>
    %52 = vector.shape_cast %51 : vector<1x2x1xf32> to vector<2x1xf32>
    %53 = vector.shape_cast %52 : vector<2x1xf32> to vector<1x2x1xf32>
    %54 = vector.shape_cast %50 : vector<1x128xf32> to vector<1x1x128xf32>
    %55 = vector.broadcast %54 : vector<1x1x128xf32> to vector<1x2x128xf32>
    %56 = vector.broadcast %53 : vector<1x2x1xf32> to vector<1x2x128xf32>
    %57 = arith.mulf %55, %56 : vector<1x2x128xf32>
    %58 = arith.addf %48, %57 : vector<1x2x128xf32>
    %c0_18 = arith.constant 0 : index
    %c9 = arith.constant 9 : index
    %c0_19 = arith.constant 0 : index
    %59 = vector.load %arg2[%c0_18, %c9, %c0_19] : memref<1x12x128xf32, #tpu.memory_space<vmem>>, vector<1x1x128xf32>
    %60 = vector.shape_cast %59 : vector<1x1x128xf32> to vector<1x128xf32>
    %61 = vector.extract_strided_slice %0 {offsets = [2, 2, 0], sizes = [1, 2, 1], strides = [1, 1, 1]} : vector<3x8x1xf32> to vector<1x2x1xf32>
    %62 = vector.shape_cast %61 : vector<1x2x1xf32> to vector<2x1xf32>
    %63 = vector.shape_cast %62 : vector<2x1xf32> to vector<1x2x1xf32>
    %64 = vector.shape_cast %60 : vector<1x128xf32> to vector<1x1x128xf32>
    %65 = vector.broadcast %64 : vector<1x1x128xf32> to vector<1x2x128xf32>
    %66 = vector.broadcast %63 : vector<1x2x1xf32> to vector<1x2x128xf32>
    %67 = arith.mulf %65, %66 : vector<1x2x128xf32>
    %68 = arith.addf %58, %67 : vector<1x2x128xf32>
    %c0_20 = arith.constant 0 : index
    %c2 = arith.constant 2 : index
    %c0_21 = arith.constant 0 : index
    %69 = vector.load %arg6[%c0_20, %c2, %c0_21] : memref<1x8x128xf32, #tpu.memory_space<vmem>>, vector<1x2x128xf32>
    tpu.vector_store %arg6[%c0_20, %c2, %c0_21], %68 {strides = array<i32>} : memref<1x8x128xf32, #tpu.memory_space<vmem>>, vector<1x2x128xf32>,
    %70 = vector.extract_strided_slice %1 {offsets = [4, 0], sizes = [2, 1], strides = [1, 1]} : vector<8x1xf32> to vector<2x1xf32>
    %71 = vector.shape_cast %70 : vector<2x1xf32> to vector<1x2x1xf32>
    %c0_22 = arith.constant 0 : index
    %c2_23 = arith.constant 2 : index
    %c0_24 = arith.constant 0 : index
    %72 = vector.load %arg2[%c0_22, %c2_23, %c0_24] : memref<1x12x128xf32, #tpu.memory_space<vmem>>, vector<1x1x128xf32>
    %73 = vector.shape_cast %72 : vector<1x1x128xf32> to vector<1x128xf32>
    %74 = vector.extract_strided_slice %0 {offsets = [0, 4, 0], sizes = [1, 2, 1], strides = [1, 1, 1]} : vector<3x8x1xf32> to vector<1x2x1xf32>
    %75 = vector.shape_cast %74 : vector<1x2x1xf32> to vector<2x1xf32>
    %76 = vector.shape_cast %75 : vector<2x1xf32> to vector<1x2x1xf32>
    %77 = vector.shape_cast %73 : vector<1x128xf32> to vector<1x1x128xf32>
    %78 = vector.broadcast %77 : vector<1x1x128xf32> to vector<1x2x128xf32>
    %79 = vector.broadcast %76 : vector<1x2x1xf32> to vector<1x2x128xf32>
    %80 = arith.mulf %78, %79 : vector<1x2x128xf32>
    %81 = vector.broadcast %71 : vector<1x2x1xf32> to vector<1x2x128xf32>
    %82 = arith.addf %81, %80 : vector<1x2x128xf32>
    %c0_25 = arith.constant 0 : index
    %c6 = arith.constant 6 : index
    %c0_26 = arith.constant 0 : index
    %83 = vector.load %arg2[%c0_25, %c6, %c0_26] : memref<1x12x128xf32, #tpu.memory_space<vmem>>, vector<1x1x128xf32>
    %84 = vector.shape_cast %83 : vector<1x1x128xf32> to vector<1x128xf32>
    %85 = vector.extract_strided_slice %0 {offsets = [1, 4, 0], sizes = [1, 2, 1], strides = [1, 1, 1]} : vector<3x8x1xf32> to vector<1x2x1xf32>
    %86 = vector.shape_cast %85 : vector<1x2x1xf32> to vector<2x1xf32>
    %87 = vector.shape_cast %86 : vector<2x1xf32> to vector<1x2x1xf32>
    %88 = vector.shape_cast %84 : vector<1x128xf32> to vector<1x1x128xf32>
    %89 = vector.broadcast %88 : vector<1x1x128xf32> to vector<1x2x128xf32>
    %90 = vector.broadcast %87 : vector<1x2x1xf32> to vector<1x2x128xf32>
    %91 = arith.mulf %89, %90 : vector<1x2x128xf32>
    %92 = arith.addf %82, %91 : vector<1x2x128xf32>
    %c0_27 = arith.constant 0 : index
    %c10 = arith.constant 10 : index
    %c0_28 = arith.constant 0 : index
    %93 = vector.load %arg2[%c0_27, %c10, %c0_28] : memref<1x12x128xf32, #tpu.memory_space<vmem>>, vector<1x1x128xf32>
    %94 = vector.shape_cast %93 : vector<1x1x128xf32> to vector<1x128xf32>
    %95 = vector.extract_strided_slice %0 {offsets = [2, 4, 0], sizes = [1, 2, 1], strides = [1, 1, 1]} : vector<3x8x1xf32> to vector<1x2x1xf32>
    %96 = vector.shape_cast %95 : vector<1x2x1xf32> to vector<2x1xf32>
    %97 = vector.shape_cast %96 : vector<2x1xf32> to vector<1x2x1xf32>
    %98 = vector.shape_cast %94 : vector<1x128xf32> to vector<1x1x128xf32>
    %99 = vector.broadcast %98 : vector<1x1x128xf32> to vector<1x2x128xf32>
    %100 = vector.broadcast %97 : vector<1x2x1xf32> to vector<1x2x128xf32>
    %101 = arith.mulf %99, %100 : vector<1x2x128xf32>
    %102 = arith.addf %92, %101 : vector<1x2x128xf32>
    %c0_29 = arith.constant 0 : index
    %c4_30 = arith.constant 4 : index
    %c0_31 = arith.constant 0 : index
    %103 = vector.load %arg6[%c0_29, %c4_30, %c0_31] : memref<1x8x128xf32, #tpu.memory_space<vmem>>, vector<1x2x128xf32>
    tpu.vector_store %arg6[%c0_29, %c4_30, %c0_31], %102 {strides = array<i32>} : memref<1x8x128xf32, #tpu.memory_space<vmem>>, vector<1x2x128xf32>,
    %104 = vector.extract_strided_slice %1 {offsets = [6, 0], sizes = [2, 1], strides = [1, 1]} : vector<8x1xf32> to vector<2x1xf32>
    %105 = vector.shape_cast %104 : vector<2x1xf32> to vector<1x2x1xf32>
    %c0_32 = arith.constant 0 : index
    %c3 = arith.constant 3 : index
    %c0_33 = arith.constant 0 : index
    %106 = vector.load %arg2[%c0_32, %c3, %c0_33] : memref<1x12x128xf32, #tpu.memory_space<vmem>>, vector<1x1x128xf32>
    %107 = vector.shape_cast %106 : vector<1x1x128xf32> to vector<1x128xf32>
    %108 = vector.extract_strided_slice %0 {offsets = [0, 6, 0], sizes = [1, 2, 1], strides = [1, 1, 1]} : vector<3x8x1xf32> to vector<1x2x1xf32>
    %109 = vector.shape_cast %108 : vector<1x2x1xf32> to vector<2x1xf32>
    %110 = vector.shape_cast %109 : vector<2x1xf32> to vector<1x2x1xf32>
    %111 = vector.shape_cast %107 : vector<1x128xf32> to vector<1x1x128xf32>
    %112 = vector.broadcast %111 : vector<1x1x128xf32> to vector<1x2x128xf32>
    %113 = vector.broadcast %110 : vector<1x2x1xf32> to vector<1x2x128xf32>
    %114 = arith.mulf %112, %113 : vector<1x2x128xf32>
    %115 = vector.broadcast %105 : vector<1x2x1xf32> to vector<1x2x128xf32>
    %116 = arith.addf %115, %114 : vector<1x2x128xf32>
    %c0_34 = arith.constant 0 : index
    %c7 = arith.constant 7 : index
    %c0_35 = arith.constant 0 : index
    %117 = vector.load %arg2[%c0_34, %c7, %c0_35] : memref<1x12x128xf32, #tpu.memory_space<vmem>>, vector<1x1x128xf32>
    %118 = vector.shape_cast %117 : vector<1x1x128xf32> to vector<1x128xf32>
    %119 = vector.extract_strided_slice %0 {offsets = [1, 6, 0], sizes = [1, 2, 1], strides = [1, 1, 1]} : vector<3x8x1xf32> to vector<1x2x1xf32>
    %120 = vector.shape_cast %119 : vector<1x2x1xf32> to vector<2x1xf32>
    %121 = vector.shape_cast %120 : vector<2x1xf32> to vector<1x2x1xf32>
    %122 = vector.shape_cast %118 : vector<1x128xf32> to vector<1x1x128xf32>
    %123 = vector.broadcast %122 : vector<1x1x128xf32> to vector<1x2x128xf32>
    %124 = vector.broadcast %121 : vector<1x2x1xf32> to vector<1x2x128xf32>
    %125 = arith.mulf %123, %124 : vector<1x2x128xf32>
    %126 = arith.addf %116, %125 : vector<1x2x128xf32>
    %c0_36 = arith.constant 0 : index
    %c11 = arith.constant 11 : index
    %c0_37 = arith.constant 0 : index
    %127 = vector.load %arg2[%c0_36, %c11, %c0_37] : memref<1x12x128xf32, #tpu.memory_space<vmem>>, vector<1x1x128xf32>
    %128 = vector.shape_cast %127 : vector<1x1x128xf32> to vector<1x128xf32>
    %129 = vector.extract_strided_slice %0 {offsets = [2, 6, 0], sizes = [1, 2, 1], strides = [1, 1, 1]} : vector<3x8x1xf32> to vector<1x2x1xf32>
    %130 = vector.shape_cast %129 : vector<1x2x1xf32> to vector<2x1xf32>
    %131 = vector.shape_cast %130 : vector<2x1xf32> to vector<1x2x1xf32>
    %132 = vector.shape_cast %128 : vector<1x128xf32> to vector<1x1x128xf32>
    %133 = vector.broadcast %132 : vector<1x1x128xf32> to vector<1x2x128xf32>
    %134 = vector.broadcast %131 : vector<1x2x1xf32> to vector<1x2x128xf32>
    %135 = arith.mulf %133, %134 : vector<1x2x128xf32>
    %136 = arith.addf %126, %135 : vector<1x2x128xf32>
    %c0_38 = arith.constant 0 : index
    %c6_39 = arith.constant 6 : index
    %c0_40 = arith.constant 0 : index
    %137 = vector.load %arg6[%c0_38, %c6_39, %c0_40] : memref<1x8x128xf32, #tpu.memory_space<vmem>>, vector<1x2x128xf32>
    tpu.vector_store %arg6[%c0_38, %c6_39, %c0_40], %136 {strides = array<i32>} : memref<1x8x128xf32, #tpu.memory_space<vmem>>, vector<1x2x128xf32>,
    %c0_41 = arith.constant 0 : index
    %c0_42 = arith.constant 0 : index
    %c0_43 = arith.constant 0 : index
    %138 = vector.load %arg6[%c0_41, %c0_42, %c0_43] : memref<1x8x128xf32, #tpu.memory_space<vmem>>, vector<1x8x128xf32>
    %cst = arith.constant 5.000000e-01 : f32
    %139 = vector.broadcast %cst : f32 to vector<1x8x128xf32>
    %140 = arith.mulf %139, %138 : vector<1x8x128xf32>
    %cst_44 = arith.constant 0.707106769 : f32
    %141 = vector.broadcast %cst_44 : f32 to vector<1x8x128xf32>
    %142 = arith.mulf %138, %141 : vector<1x8x128xf32>
    %143 = math.erf %142 : vector<1x8x128xf32>
    %cst_45 = arith.constant 1.000000e+00 : f32
    %144 = vector.broadcast %cst_45 : f32 to vector<1x8x128xf32>
    %145 = arith.addf %144, %143 : vector<1x8x128xf32>
    %146 = arith.mulf %140, %145 : vector<1x8x128xf32>
    %c0_46 = arith.constant 0 : index
    %c0_47 = arith.constant 0 : index
    %c0_48 = arith.constant 0 : index
    %147 = vector.load %arg5[%c0_46, %c0_47, %c0_48] : memref<1x8x128xf32, #tpu.memory_space<vmem>>, vector<1x8x128xf32>
    tpu.vector_store %arg5[%c0_46, %c0_47, %c0_48], %146 {strides = array<i32>} : memref<1x8x128xf32, #tpu.memory_space<vmem>>, vector<1x8x128xf32>,
    return
  }
  func.func @transform_0(%arg0: i32, %arg1: i32) -> (i32, i32, i32) {
    %c0_i32 = arith.constant 0 : i32
    %c0_i32_0 = arith.constant 0 : i32
    return %arg0, %c0_i32, %arg1 : i32, i32, i32
  }
  func.func @transform_1(%arg0: i32, %arg1: i32) -> (i32, i32, i32) {
    %c0_i32 = arith.constant 0 : i32
    %c0_i32_0 = arith.constant 0 : i32
    %c0_i32_1 = arith.constant 0 : i32
    %c0_i32_2 = arith.constant 0 : i32
    return %c0_i32, %c0_i32_0, %c0_i32_1 : i32, i32, i32
  }
  func.func @transform_2(%arg0: i32, %arg1: i32) -> (i32, i32) {
    %c0_i32 = arith.constant 0 : i32
    %c0_i32_0 = arith.constant 0 : i32
    %c0_i32_1 = arith.constant 0 : i32
    return %c0_i32, %c0_i32_0 : i32, i32
  }
  func.func @transform_3(%arg0: i32, %arg1: i32) -> (i32, i32, i32) {
    %c0_i32 = arith.constant 0 : i32
    %c0_i32_0 = arith.constant 0 : i32
    return %arg0, %c0_i32, %arg1 : i32, i32, i32
  }
}

</mosaic_0001>

<bundles_post_ra>
// kernel: tpu_custom_call.1
= control target key start
LH: loop header
LB: loop body
LE: loop exit
PB: predicated region body
PF: predicated region fallthrough
CT: control target
= control target key end

     0   :  { %8 = vsyncpa [#allocation4], 0  ;;  %s698_s0 = inlined_call_operand.vmem [shape: f32[2,12,128], index: 0, kind: input, shape index: {}]   ;;  %s699_s1 = inlined_call_operand.vmem [shape: f32[3,8,1], index: 1, kind: input, shape index: {}]   ;;  %s700_s2 = inlined_call_operand.vmem [shape: f32[8,1], index: 2, kind: input, shape index: {}]   ;;  %s701_s3 = inlined_call_operand.hbm [shape: f32[2,8,128], index: 3, kind: output, shape index: {}]  }
   0x1   :  { %10 = vsyncpa [#allocation4 + $0x1], 0  ;;  %s587_s12 = smov 0   ;;  %s589_s13 = smov 0  }
   0x2   :  { %s591_s14 = smov 0   ;;  %s593_s15 = smov 0  }
   0x3   :  { %s595_s16 = smov 0   ;;  %s597_s17 = smov 0  }
   0x4 LB: > { %s402_s18 = sadd.s32 4294967295, %s563_s17   ;;  %s403_s19 = sadd.s32 4294967294, %s563_s17   ;;  %s563_s17 = sphi %s597_s17, %s16_s17   ;;  %s559_s16 = sphi %s595_s16, %s708_s16   ;;  %s555_s15 = sphi %s593_s15, %s707_s15   ;;  %s551_s14 = sphi %s591_s14, %s706_s14   ;;  %s547_s13 = sphi %s589_s13, %s705_s13   ;;  %s543_s12 = sphi %s587_s12, %s704_s12  }
   0x5   : > { %s28_s20 = sadd.s32 1, %s559_s16  ;;  %s107_s21 = sadd.s32 1, %s551_s14 }
   0x6   : > { %p30_p0 = scmp.ge.s32.totalorder %s28_s20, 2  ;;  %p117_p1 = scmp.ne.s32.totalorder %s551_s14, %s547_s13 }
   0x7   : > { %p118_p2 = scmp.eq.s32.totalorder %s402_s18, 1  ;;  %p123_p3 = scmp.ne.s32.totalorder %s547_s13, %s543_s12 }
   0x8   : > { %s710_s20 = smov (%p30_p0, %s28_s20), 0  ;;  %p124_p5 = scmp.eq.s32.totalorder %s403_s19, 1 }
   0x9   : > { %p627_p4 = por %p118_p2, %p117_p1  ;;  %s102_s23 = ssub.s32 %s559_s16, %s710_s20 }
   0xa   : > { %p406_p6 = scmp.ge.s32.totalorder %s563_s17, 1  ;;  %p105_p7 = scmp.eq.s32.totalorder %s102_s23, 0 }
   0xb   : > { %p634_p8 = por %p124_p5, %p123_p3  ;;  %p159_p9 = scmp.lt.s32.totalorder %s563_s17, 3 }
   0xc   : > { %s640_s25 = scalar_select %p105_p7, %s551_s14, %s107_s21  }
   0xd   : > { %p160_p10 = pnand %p406_p6, %p159_p9 }
   0xe   : > { %p186_p11 = scmp.lt.s32.totalorder (!%p160_p10), %s555_s15, 1  ;;  %s183_s18 = sand.u32 (!%p160_p10), 1, %s547_s13  }
   0xf   : > { %163 = sbr.rel (%p160_p10) target bundleno = 198 (0xc6), region = 32  ;;  %s407_s19 = sshll.u32 (!%p160_p10), %s183_s18, 3 }
  0x10   : > { %s423_s21 = sshll.u32 (!%p160_p10), %s555_s15, 7  ;;  %s185_s23 = scalar_lea.vmem (!%p160_p10), [#allocation3], %s407_s19 }
  0x11   : > { %s328_s26 = sshll.u32 (!%p160_p10), %s185_s23, 4  ;;  %s326_s29 = scalar_lea.hbm (!%p160_p10), %s701_s3, %s423_s21  ;;  %s329_s26 = int_to_ptr.vmem [resolvable:$true] %s328_s26 }
  0x12   : > { %s314_s30 = scalar_lea.sflag (!%p160_p10), [#allocation4], %s183_s18  ;;  %s487_s4 = scalar_lea.vmem (!%p160_p10), %s329_s26, 128 }
  0x13   : > { %p488_p12 = scmp.ne.s32.totalorder (!%p160_p10), %s329_s26, %s487_s4  ;;  %s566_s5 = smov (!%p160_p10), [#allocation3]  }
  0x14   : > { %v195_v0 = vld [vmem:[%s699_s1 + $0x8] sm:$0xff]  ;;  %v194_v1 = vld [vmem:[%s699_s1] sm:$0xff]  ;;  %v565_v2 = vmov 0   ;;  %v196_v3 = vld [vmem:[%s699_s1 + $0x10] sm:$0xff]  ;;  %s187_s7 = scalar_select %p186_p11, %s555_s15, 1 }
  0x15   : > { %484 = vset.pattern.permute.xlu1 %v565_v2  ;;  %483 = vset.pattern.permute.xlu0 %v565_v2  ;;  %v197_v4 = vld [vmem:[%s700_s2] sm:$0xff]  ;;  %p489_p13 = pnand %p488_p12, %p627_p4  ;;  %s491_s6 = sshll.u32 %s566_s5, 4  ;;  %s492_s6 = int_to_ptr.vmem [resolvable:$false] %s491_s6 }
  0x16   : > { %222 = vperm.xlu1 %484, %v195_v0   ;;  %205 = vperm.xlu0 %483, %v194_v1   ;;  %s426_s8 = sshll.u32 %s187_s7, 4  ;;  %s493_s15 = scalar_lea.vmem %s492_s6, 256 }
  0x17   : > { %s193_s11 = scalar_lea.vmem %s698_s0, %s426_s8  ;;  %p490_p0 = pneg %p489_p13 }
  0x18   : > { %v411_v6 = vld [vmem:[%s193_s11 + $0x4] ss:$0 sm:$0xff]  ;;  %v410_v8 = vld [vmem:[%s193_s11] ss:$0 sm:$0xff]  ;;  %v413_v9 = vld [vmem:[%s193_s11 + $0x1] ss:$0 sm:$0xff]  ;;  %p494_p1 = scmp.lt.s32.totalorder %s329_s26, %s492_s6  ;;  %p495_p2 = scmp.lt.s32.totalorder %s493_s15, %s487_s4 }
  0x19   : > { %v416_v10 = vld [vmem:[%s193_s11 + $0x2] ss:$0 sm:$0xff]  ;;  %v419_v11 = vld [vmem:[%s193_s11 + $0x3] ss:$0 sm:$0xff]  ;;  %v414_v12 = vld [vmem:[%s193_s11 + $0x5] ss:$0 sm:$0xff] }
  0x1a   : > { %234 = vperm.xlu1 %484, %v196_v3   ;;  %211 = vperm.xlu0 %483, %v197_v4   ;;  %v417_v13 = vld [vmem:[%s193_s11 + $0x6] ss:$0 sm:$0xff]  ;;  %v420_v14 = vld [vmem:[%s193_s11 + $0x7] ss:$0 sm:$0xff]  ;;  %v412_v15 = vld [vmem:[%s193_s11 + $0x8] ss:$0 sm:$0xff]  ;;  %p496_p3 = por %p495_p2, %p494_p1 }
  0x1b   : > { %v415_v17 = vld [vmem:[%s193_s11 + $0x9] ss:$0 sm:$0xff]  ;;  %v418_v18 = vld [vmem:[%s193_s11 + $0xa] ss:$0 sm:$0xff]  ;;  %v421_v19 = vld [vmem:[%s193_s11 + $0xb] ss:$0 sm:$0xff] }
  0x1c   : > { %p497_p5 = pnand %p496_p3, %p490_p0 }
  0x91   : > { %v223_v5 = vpop.permute.xlu1 %222  ;;  %v206_v7 = vpop.permute.xlu0 %205 }
  0x92   : > { %v208_v21 = vmul.f32 %v410_v8, %v206_v7  ;;  %v245_v22 = vmul.f32 %v413_v9, %v206_v7  ;;  %v267_v23 = vmul.f32 %v416_v10, %v206_v7  ;;  %v289_v24 = vmul.f32 %v419_v11, %v206_v7 }
  0x93   : > { %v225_v25 = vmul.f32 %v411_v6, %v223_v5  ;;  %v252_v26 = vmul.f32 %v414_v12, %v223_v5  ;;  %v274_v27 = vmul.f32 %v417_v13, %v223_v5  ;;  %v296_v28 = vmul.f32 %v420_v14, %v223_v5 }
  0x95   : > { %v235_v16 = vpop.permute.xlu1 %234  ;;  %v212_v20 = vpop.permute.xlu0 %211 }
  0x96   : > { %v214_v29 = vadd.f32 %v212_v20, %v208_v21  ;;  %v246_v30 = vadd.f32 %v245_v22, %v212_v20  ;;  %v268_v31 = vadd.f32 %v267_v23, %v212_v20  ;;  %v290_v32 = vadd.f32 %v289_v24, %v212_v20 }
  0x97   : > { %v237_v33 = vmul.f32 %v412_v15, %v235_v16  ;;  %v259_v34 = vmul.f32 %v415_v17, %v235_v16  ;;  %v281_v35 = vmul.f32 %v418_v18, %v235_v16  ;;  %v303_v36 = vmul.f32 %v421_v19, %v235_v16 }
  0x98   : > { %v226_v37 = vadd.f32 %v225_v25, %v214_v29  ;;  %v253_v38 = vadd.f32 %v252_v26, %v246_v30  ;;  %v275_v39 = vadd.f32 %v274_v27, %v268_v31  ;;  %v297_v40 = vadd.f32 %v296_v28, %v290_v32 }
  0x9a   : > { %v238_v41 = vadd.f32 %v237_v33, %v226_v37  ;;  %v260_v42 = vadd.f32 %v259_v34, %v253_v38  ;;  %v282_v43 = vadd.f32 %v281_v35, %v275_v39  ;;  %v304_v44 = vadd.f32 %v303_v36, %v297_v40 }
  0x9c   : > { %239 = vst [vmem:[#allocation2] sm:$0x3] %v238_v41  ;;  %261 = vst [vmem:[#allocation2] sm:$0xc] %v260_v42 }
  0x9d   : > { %283 = vst [vmem:[#allocation2] sm:$0x30] %v282_v43  ;;  %305 = vst [vmem:[#allocation2] sm:$0xc0] %v304_v44 }
  0xa4   : > { %v306_v45 = vld [vmem:[#allocation2] sm:$0xff] }
  0xa5   : > { %v308_v46 = vmul.f32 0.70710677, %v306_v45  ;;  %v307_v48 = vmul.f32 0.5, %v306_v45 }
  0xa7   : > { %485 = verf.f32 %v308_v46 }
  0xb4   : > { %v486_v47 = vpop.eup %485 }
  0xb5   : > { %v310_v49 = vadd.f32 1.0, %v486_v47 }
  0xb7   : > { %v311_v50 = vmul.f32 %v310_v49, %v307_v48 }
  0xb9   : > { %312 = vst [vmem:[%s185_s23] sm:$0xff] %v311_v50 }
  0xba   : > { %500 = shalt.err (!%p497_p5)
}
  0xbb   : > { %s501_s7 = scalar_lea.hbm %s326_s29, 128  ;;  %s505_s10 = scalar_lea.hbm %s701_s3, 256 }
  0xbc   : > { %p502_p6 = scmp.ne.s32.totalorder %s326_s29, %s501_s7  ;;  %p506_p10 = scmp.lt.s32.totalorder %s326_s29, %s701_s3 }
  0xbd   : > { %p507_p11 = scmp.lt.s32.totalorder %s505_s10, %s501_s7 }
  0xbe   : > { %p503_p7 = pnand %p502_p6, %p627_p4 }
  0xbf   : > { %p508_p12 = por %p507_p11, %p506_p10 }
  0xc0   : > { %p504_p9 = pneg %p503_p7 }
  0xc2   : > { %p509_p13 = pnand %p508_p12, %p504_p9 }
  0xc4   : > { %512 = shalt.err (!%p509_p13)
}
  0xc5   : > { %427 = dma.vmem_to_hbm [thread:$0]  (%p627_p4), %s329_s26, 128, %s326_s29, %s314_s30  }
  0xc6 PF: > { %p433_p0 = scmp.ge.s32.totalorder %s563_s17, 2  ;;  %s340_s19 = sand.u32 1, %s543_s12  }
  0xc7   : > { %s341_s21 = scalar_lea.sflag [#allocation4], %s340_s19 }
  0xc8   : > { %p430_p1 = pnand %p433_p0, %p634_p8 }
  0xca   : > { %p431_p2 = pneg %p430_p1 }
  0xcc   : > { %538 = dma.done.wait (%p431_p2), %s341_s21, 128  }
  0xcd   : > { %540 = vsyncadd (%p431_p2), %s341_s21, 4294967168  ;;  %s16_s17 = sadd.s32 1, %s563_s17   ;;  %s704_s12 = smov %s547_s13 }
  0xce   : > { %p13_p3 = scmp.ge.s32.totalorder %s16_s17, 4   ;;  %s705_s13 = smov %s551_s14 }
  0xcf   : > { %s706_s14 = smov %s640_s25  ;;  %s707_s15 = smov %s559_s16 }
  0xd0   : > { %s708_s16 = smov %s710_s20  ;;  %15 = sbr.rel (!%p13_p3) target bundleno = 4 (0x4), region = 67 }
  0xd5   :  { %346 = vsyncpa [#allocation4], 1 }
  0xd6   :  { %348 = vsyncpa [#allocation4 + $0x1], 1 }

</bundles_post_ra>
